<compile_context>
chip_gen: v7x
topology: tpu7x:2x2x1
jax: 0.10.0
libtpu: 0.0.40
codegen_flags: <defaults>
</compile_context>

<pallas_src>
import functools

import jax
import jax.numpy as jnp
from jax.experimental import pallas as pl
from jax.experimental.pallas import tpu as pltpu


def _round_up(a, b):
    return (a + b - 1) // b * b


_INV_SQRT2 = 0.7071067811865476


def _erf(z):
    # Abramowitz & Stegun 7.1.26 rational approximation, |err| <= 1.5e-7.
    # Only VPU ops + one EUP exp, so it is guaranteed to lower in Mosaic and
    # matches PyTorch's exact-GELU far below bf16 operand noise.
    a1, a2, a3, a4, a5 = (0.254829592, -0.284496736, 1.421413741,
                          -1.453152027, 1.061405429)
    p = 0.3275911
    az = jnp.abs(z)
    t = 1.0 / (1.0 + p * az)
    poly = ((((a5 * t + a4) * t + a3) * t + a2) * t + a1) * t
    y = 1.0 - poly * jnp.exp(-az * az)
    return jnp.where(z >= 0, y, -y)


def _gelu_exact(h):
    # Exact (erf-based) GELU, matching PyTorch nn.GELU() default.
    return 0.5 * h * (1.0 + _erf(h * _INV_SQRT2))


def _mlp_kernel(x_ref, w1_ref, b1_ref, w2_ref, b2_ref, o_ref):
    # x_ref : (C, tn) f32      w1_ref: (Hf, C) bf16   b1_ref: (Hf, 1) f32
    # w2_ref: (O, Hf) bf16     b2_ref: (O, 1)  f32    o_ref : (O, tn)
    x = x_ref[...].astype(jnp.bfloat16)                   # bf16 operands -> MXU
    h = jnp.dot(w1_ref[...], x,
                preferred_element_type=jnp.float32)       # (Hf, tn) f32 acc
    h = h + b1_ref[...]                                   # lane-broadcast bias
    h = _gelu_exact(h)                                    # f32 on VPU/EUP
    # TODO(synk): nn.Dropout with p>0 (training) would need pltpu.prng_* +
    # masking; the module default drop=0.0 makes it the identity, so omitted.
    y = jnp.dot(w2_ref[...], h.astype(jnp.bfloat16),
                preferred_element_type=jnp.float32)       # (O, tn) f32 acc
    y = y + b2_ref[...]
    o_ref[...] = y.astype(o_ref.dtype)


def mlp_forward(x, w1, b1, w2, b2, *, tile_n=512):
    """Fused Mlp forward (1x1 conv fc1 -> GELU -> 1x1 conv fc2) for NCHW input.

    Args:
      x : (B, C, H, W) float32 (NCHW, like PyTorch).
      w1: (Hf, C, 1, 1) fc1 conv weight (PyTorch OIHW layout).  b1: (Hf,)
      w2: (O, Hf, 1, 1) fc2 conv weight.                        b2: (O,)
      tile_n: spatial (lane) tile size; rounded to a multiple of 128.

    Returns: (B, O, H, W) in x.dtype, matching the PyTorch module output.
    """
    B, C, H, W = x.shape
    Hf = w1.shape[0]
    O = w2.shape[0]
    HW = H * W

    # Lane-dense spatial tile (multiple of 128 -> unmasked vector stores).
    tn = _round_up(min(tile_n, _round_up(HW, 128)), 128)
    HW_pad = _round_up(HW, tn)

    x3 = x.reshape(B, C, HW)            # pure reshape, no HBM transpose
    if HW_pad != HW:
        x3 = jnp.pad(x3, ((0, 0), (0, 0), (0, HW_pad - HW)))

    # Weights cast once to bf16 (resident in VMEM); biases stay f32.
    w1_2d = w1.reshape(Hf, C).astype(jnp.bfloat16)
    w2_2d = w2.reshape(O, Hf).astype(jnp.bfloat16)
    b1_2d = b1.reshape(Hf, 1).astype(jnp.float32)
    b2_2d = b2.reshape(O, 1).astype(jnp.float32)

    grid = (B, HW_pad // tn)

    cost = pl.CostEstimate(
        flops=2 * B * HW_pad * (C * Hf + Hf * O),
        transcendentals=B * HW_pad * Hf,                  # exp inside GELU
        bytes_accessed=(x3.size * x3.dtype.itemsize
                        + w1_2d.size * 2 + w2_2d.size * 2
                        + b1_2d.size * 4 + b2_2d.size * 4
                        + B * O * HW_pad * x.dtype.itemsize),
    )

    out3 = pl.pallas_call(
        _mlp_kernel,
        out_shape=jax.ShapeDtypeStruct((B, O, HW_pad), x.dtype),
        grid=grid,
        in_specs=[
            pl.BlockSpec((None, C, tn), lambda b, j: (b, 0, j)),  # x tile
            pl.BlockSpec((Hf, C), lambda b, j: (0, 0)),           # w1 resident
            pl.BlockSpec((Hf, 1), lambda b, j: (0, 0)),           # b1 resident
            pl.BlockSpec((O, Hf), lambda b, j: (0, 0)),           # w2 resident
            pl.BlockSpec((O, 1), lambda b, j: (0, 0)),            # b2 resident
        ],
        out_specs=pl.BlockSpec((None, O, tn), lambda b, j: (b, 0, j)),
        compiler_params=pltpu.CompilerParams(
            dimension_semantics=("parallel", "parallel")),
        cost_estimate=cost,
    )(x3, w1_2d, b1_2d, w2_2d, b2_2d)

    out = out3[:, :, :HW].reshape(B, O, H, W)
    return out


if __name__ == "__main__":
    # Small shapes consistent with the module: batch=2, in_features=4,
    # spatial 16x16, hidden_features=32, out_features defaults to in_features.
    B, C, H, W = 2, 4, 16, 16
    Hf, O = 32, 4

    key = jax.random.PRNGKey(0)
    kx, k1, kb1, k2, kb2 = jax.random.split(key, 5)
    x = jax.random.normal(kx, (B, C, H, W), dtype=jnp.float32)
    w1 = jax.random.normal(k1, (Hf, C, 1, 1), dtype=jnp.float32) * 0.05
    b1 = jax.random.normal(kb1, (Hf,), dtype=jnp.float32) * 0.05
    w2 = jax.random.normal(k2, (O, Hf, 1, 1), dtype=jnp.float32) * 0.05
    b2 = jax.random.normal(kb2, (O,), dtype=jnp.float32) * 0.05

    # tile_n=128 so the toy shape exercises a multi-block (2, 2) pipelined grid.
    fwd = jax.jit(functools.partial(mlp_forward, tile_n=128))
    out = jax.block_until_ready(fwd(x, w1, b1, w2, b2))

    # f32 reference (exact GELU).  The kernel feeds bf16 operands to the MXU
    # (f32 accumulation), so compare with a correspondingly loose tolerance.
    hp = jax.lax.Precision.HIGHEST
    h = jnp.einsum("bchw,fc->bfhw", x, w1.reshape(Hf, C), precision=hp)
    h = h + b1[None, :, None, None]
    h = 0.5 * h * (1.0 + jax.scipy.special.erf(h * (2.0 ** -0.5)))
    ref = jnp.einsum("bfhw,of->bohw", h, w2.reshape(O, Hf), precision=hp)
    ref = ref + b2[None, :, None, None]

    assert out.shape == (B, O, H, W), out.shape
    max_err = float(jnp.max(jnp.abs(out - ref)))
    assert jnp.allclose(out, ref, atol=1e-2, rtol=1e-2), max_err

    print("KERNEL_OK")
</pallas_src>

<mosaic_0001>
module attributes {stable_mosaic.version = 11 : i64} {
  func.func @_mlp_kernel(%arg0: i32, %arg1: i32, %arg2: memref<1x4x128xf32, #tpu.memory_space<vmem>>, %arg3: memref<32x4xbf16, #tpu.memory_space<vmem>>, %arg4: memref<32x1xf32, #tpu.memory_space<vmem>>, %arg5: memref<4x32xbf16, #tpu.memory_space<vmem>>, %arg6: memref<4x1xf32, #tpu.memory_space<vmem>>, %arg7: memref<1x4x128xf32, #tpu.memory_space<vmem>>) attributes {dimension_semantics = [#tpu.dimension_semantics<parallel>, #tpu.dimension_semantics<parallel>], iteration_bounds = array<i64: 2, 2>, scalar_prefetch = 0 : i64, scratch_operands = 0 : i64, tpu.core_type = #tpu.core_type<tc>, window_params = [{transform_indices = @transform_0, window_bounds = array<i64: 1, 4, 128>}, {pipeline_mode = #tpu.pipeline_mode<synchronous>, transform_indices = @transform_1, window_bounds = array<i64: 32, 4>}, {pipeline_mode = #tpu.pipeline_mode<synchronous>, transform_indices = @transform_2, window_bounds = array<i64: 32, 1>}, {pipeline_mode = #tpu.pipeline_mode<synchronous>, transform_indices = @transform_3, window_bounds = array<i64: 4, 32>}, {pipeline_mode = #tpu.pipeline_mode<synchronous>, transform_indices = @transform_4, window_bounds = array<i64: 4, 1>}, {transform_indices = @transform_5, window_bounds = array<i64: 1, 4, 128>}]} {
    %c0 = arith.constant 0 : index
    %c0_0 = arith.constant 0 : index
    %c0_1 = arith.constant 0 : index
    %0 = vector.load %arg2[%c0, %c0_0, %c0_1] : memref<1x4x128xf32, #tpu.memory_space<vmem>>, vector<1x4x128xf32>
    %1 = vector.shape_cast %0 : vector<1x4x128xf32> to vector<4x128xf32>
    %2 = arith.truncf %1 : vector<4x128xf32> to vector<4x128xbf16>
    %c0_2 = arith.constant 0 : index
    %c0_3 = arith.constant 0 : index
    %3 = vector.load %arg3[%c0_2, %c0_3] : memref<32x4xbf16, #tpu.memory_space<vmem>>, vector<32x4xbf16>
    %cst = arith.constant dense<0.000000e+00> : vector<32x128xf32>
    %4 = tpu.matmul %3, %2, %cst {dimension_numbers = #tpu.dot_dimension_numbers<[1], [0], [0], [1], [0, 0, 1, 1], [], []>} : vector<32x4xbf16>, vector<4x128xbf16>, vector<32x128xf32> -> vector<32x128xf32>
    %c0_4 = arith.constant 0 : index
    %c0_5 = arith.constant 0 : index
    %5 = vector.load %arg4[%c0_4, %c0_5] : memref<32x1xf32, #tpu.memory_space<vmem>>, vector<32x1xf32>
    %6 = vector.broadcast %5 : vector<32x1xf32> to vector<32x128xf32>
    %7 = arith.addf %4, %6 : vector<32x128xf32>
    %cst_6 = arith.constant 5.000000e-01 : f32
    %8 = vector.broadcast %cst_6 : f32 to vector<32x128xf32>
    %9 = arith.mulf %8, %7 : vector<32x128xf32>
    %cst_7 = arith.constant 0.707106769 : f32
    %10 = vector.broadcast %cst_7 : f32 to vector<32x128xf32>
    %11 = arith.mulf %7, %10 : vector<32x128xf32>
    %12 = math.absf %11 : vector<32x128xf32>
    %cst_8 = arith.constant 0.327591091 : f32
    %13 = vector.broadcast %cst_8 : f32 to vector<32x128xf32>
    %14 = arith.mulf %13, %12 : vector<32x128xf32>
    %cst_9 = arith.constant 1.000000e+00 : f32
    %15 = vector.broadcast %cst_9 : f32 to vector<32x128xf32>
    %16 = arith.addf %15, %14 : vector<32x128xf32>
    %cst_10 = arith.constant 1.000000e+00 : f32
    %17 = vector.broadcast %cst_10 : f32 to vector<32x128xf32>
    %18 = arith.divf %17, %16 : vector<32x128xf32>
    %cst_11 = arith.constant 1.06140542 : f32
    %19 = vector.broadcast %cst_11 : f32 to vector<32x128xf32>
    %20 = arith.mulf %19, %18 : vector<32x128xf32>
    %cst_12 = arith.constant -1.45315206 : f32
    %21 = vector.broadcast %cst_12 : f32 to vector<32x128xf32>
    %22 = arith.addf %20, %21 : vector<32x128xf32>
    %23 = arith.mulf %22, %18 : vector<32x128xf32>
    %cst_13 = arith.constant 1.42141378 : f32
    %24 = vector.broadcast %cst_13 : f32 to vector<32x128xf32>
    %25 = arith.addf %23, %24 : vector<32x128xf32>
    %26 = arith.mulf %25, %18 : vector<32x128xf32>
    %cst_14 = arith.constant -0.284496725 : f32
    %27 = vector.broadcast %cst_14 : f32 to vector<32x128xf32>
    %28 = arith.addf %26, %27 : vector<32x128xf32>
    %29 = arith.mulf %28, %18 : vector<32x128xf32>
    %cst_15 = arith.constant 0.254829586 : f32
    %30 = vector.broadcast %cst_15 : f32 to vector<32x128xf32>
    %31 = arith.addf %29, %30 : vector<32x128xf32>
    %32 = arith.mulf %31, %18 : vector<32x128xf32>
    %cst_16 = arith.constant 0.000000e+00 : f32
    %33 = vector.broadcast %cst_16 : f32 to vector<32x128xf32>
    %34 = arith.subf %33, %12 : vector<32x128xf32>
    %35 = arith.mulf %34, %12 : vector<32x128xf32>
    %36 = math.exp %35 : vector<32x128xf32>
    %37 = arith.mulf %32, %36 : vector<32x128xf32>
    %cst_17 = arith.constant 1.000000e+00 : f32
    %38 = vector.broadcast %cst_17 : f32 to vector<32x128xf32>
    %39 = arith.subf %38, %37 : vector<32x128xf32>
    %cst_18 = arith.constant 0.000000e+00 : f32
    %40 = vector.broadcast %cst_18 : f32 to vector<32x128xf32>
    %41 = arith.cmpf oge, %11, %40 : vector<32x128xf32>
    %cst_19 = arith.constant 0.000000e+00 : f32
    %42 = vector.broadcast %cst_19 : f32 to vector<32x128xf32>
    %43 = arith.subf %42, %39 : vector<32x128xf32>
    %44 = arith.select %41, %39, %43 : vector<32x128xi1>, vector<32x128xf32>
    %cst_20 = arith.constant 1.000000e+00 : f32
    %45 = vector.broadcast %cst_20 : f32 to vector<32x128xf32>
    %46 = arith.addf %45, %44 : vector<32x128xf32>
    %47 = arith.mulf %9, %46 : vector<32x128xf32>
    %c0_21 = arith.constant 0 : index
    %c0_22 = arith.constant 0 : index
    %48 = vector.load %arg5[%c0_21, %c0_22] : memref<4x32xbf16, #tpu.memory_space<vmem>>, vector<4x32xbf16>
    %49 = arith.truncf %47 : vector<32x128xf32> to vector<32x128xbf16>
    %cst_23 = arith.constant dense<0.000000e+00> : vector<4x128xf32>
    %50 = tpu.matmul %48, %49, %cst_23 {dimension_numbers = #tpu.dot_dimension_numbers<[1], [0], [0], [1], [0, 0, 1, 1], [], []>} : vector<4x32xbf16>, vector<32x128xbf16>, vector<4x128xf32> -> vector<4x128xf32>
    %c0_24 = arith.constant 0 : index
    %c0_25 = arith.constant 0 : index
    %51 = vector.load %arg6[%c0_24, %c0_25] : memref<4x1xf32, #tpu.memory_space<vmem>>, vector<4x1xf32>
    %52 = vector.broadcast %51 : vector<4x1xf32> to vector<4x128xf32>
    %53 = arith.addf %50, %52 : vector<4x128xf32>
    %c0_26 = arith.constant 0 : index
    %c0_27 = arith.constant 0 : index
    %c0_28 = arith.constant 0 : index
    %54 = vector.load %arg7[%c0_26, %c0_27, %c0_28] : memref<1x4x128xf32, #tpu.memory_space<vmem>>, vector<1x4x128xf32>
    %55 = vector.shape_cast %54 : vector<1x4x128xf32> to vector<4x128xf32>
    %56 = vector.shape_cast %53 : vector<4x128xf32> to vector<1x4x128xf32>
    tpu.vector_store %arg7[%c0_26, %c0_27, %c0_28], %56 {strides = array<i32>} : memref<1x4x128xf32, #tpu.memory_space<vmem>>, vector<1x4x128xf32>,
    return
  }
  func.func @transform_0(%arg0: i32, %arg1: i32) -> (i32, i32, i32) {
    %c0_i32 = arith.constant 0 : i32
    %c0_i32_0 = arith.constant 0 : i32
    return %arg0, %c0_i32, %arg1 : i32, i32, i32
  }
  func.func @transform_1(%arg0: i32, %arg1: i32) -> (i32, i32) {
    %c0_i32 = arith.constant 0 : i32
    %c0_i32_0 = arith.constant 0 : i32
    %c0_i32_1 = arith.constant 0 : i32
    return %c0_i32, %c0_i32_0 : i32, i32
  }
  func.func @transform_2(%arg0: i32, %arg1: i32) -> (i32, i32) {
    %c0_i32 = arith.constant 0 : i32
    %c0_i32_0 = arith.constant 0 : i32
    %c0_i32_1 = arith.constant 0 : i32
    return %c0_i32, %c0_i32_0 : i32, i32
  }
  func.func @transform_3(%arg0: i32, %arg1: i32) -> (i32, i32) {
    %c0_i32 = arith.constant 0 : i32
    %c0_i32_0 = arith.constant 0 : i32
    %c0_i32_1 = arith.constant 0 : i32
    return %c0_i32, %c0_i32_0 : i32, i32
  }
  func.func @transform_4(%arg0: i32, %arg1: i32) -> (i32, i32) {
    %c0_i32 = arith.constant 0 : i32
    %c0_i32_0 = arith.constant 0 : i32
    %c0_i32_1 = arith.constant 0 : i32
    return %c0_i32, %c0_i32_0 : i32, i32
  }
  func.func @transform_5(%arg0: i32, %arg1: i32) -> (i32, i32, i32) {
    %c0_i32 = arith.constant 0 : i32
    %c0_i32_0 = arith.constant 0 : i32
    return %arg0, %c0_i32, %arg1 : i32, i32, i32
  }
}

</mosaic_0001>

<bundles_post_ra>
// kernel: mlp_forward.1
= control target key start
LH: loop header
LB: loop body
LE: loop exit
PB: predicated region body
PF: predicated region fallthrough
CT: control target
= control target key end

     0   :  { %s778_s18 = smov 0   ;;  %s780_s19 = smov 0   ;;  %s897_s0 = inlined_call_operand.vmem [shape: f32[2,4,256], index: 0, kind: input, shape index: {}]   ;;  %s898_s1 = inlined_call_operand.vmem [shape: bf16[32,4], index: 1, kind: input, shape index: {}]   ;;  %s899_s2 = inlined_call_operand.vmem [shape: f32[32,1], index: 2, kind: input, shape index: {}]   ;;  %s900_s3 = inlined_call_operand.vmem [shape: bf16[4,32], index: 3, kind: input, shape index: {}]   ;;  %s901_s4 = inlined_call_operand.vmem [shape: f32[4,1], index: 4, kind: input, shape index: {}]   ;;  %s902_s5 = inlined_call_operand.vmem [shape: f32[2,4,256], index: 5, kind: output, shape index: {}]  }
   0x1   :  { %s782_s20 = smov 0   ;;  %s784_s21 = smov 0  }
   0x2   :  { %s786_s22 = smov 0  }
   0x3 LB: > { %s24_s23 = sadd.s32 1, %s735_s20  ;;  %s27_s24 = sadd.s32 1, %s739_s21  ;;  %s743_s22 = sphi %s786_s22, %s15_s22   ;;  %s739_s21 = sphi %s784_s21, %s906_s21   ;;  %s735_s20 = sphi %s782_s20, %s905_s20   ;;  %s731_s19 = sphi %s780_s19, %s904_s19   ;;  %s727_s18 = sphi %s778_s18, %s903_s18  }
   0x4   : > { %p25_p0 = scmp.ge.s32.totalorder %s24_s23, 2  ;;  %p609_p1 = scmp.ge.s32.totalorder %s743_s22, 1 }
   0x5   : > { %p206_p2 = scmp.lt.s32.totalorder %s743_s22, 5 }
   0x6   : > { %s908_s23 = smov (%p25_p0, %s24_s23), 0  ;;  %s910_s24 = smov (!%p25_p0, %s27_s24), %s739_s21 }
   0x7   : > { %p207_p3 = pnand %p609_p1, %p206_p2  ;;  %p29_p4 = scmp.ge.s32.totalorder %s910_s24, 2 }
   0x8   : > { %p240_p5 = scmp.lt.s32.totalorder (!%p207_p3), %s731_s19, 1  ;;  %p242_p6 = scmp.lt.s32.totalorder (!%p207_p3), %s727_s18, 1  ;;  %v687_v0 = vld [vmem:[%s898_s1] sm:$0xff] (!%p207_p3)   ;;  %vm297_vm0 = vcmask (!%p207_p3), 31744   ;;  %v745_v2 = vmov (!%p207_p3), 0   ;;  %v265_v3 = vld [vmem:[%s899_s2 + $0x10] sm:$0xff] (!%p207_p3) }
   0x9   : > { %s912_s24 = smov (%p29_p4, %s910_s24), 0  ;;  %210 = sbr.rel (%p207_p3) target bundleno = 517 (0x205), region = 40 }
   0xa   : > { %629 = vmatprep.mubr.msk.bf16.mxu0 (!%p207_p3), %vm297_vm0, %v687_v0  ;;  %v263_v1 = vld [vmem:[%s899_s2] sm:$0xff] (!%p207_p3)  ;;  %685 = vset.pattern.permute.xlu0 (!%p207_p3), %v745_v2  ;;  %v264_v4 = vld [vmem:[%s899_s2 + $0x8] sm:$0xff] (!%p207_p3)  ;;  %v266_v5 = vld [vmem:[%s899_s2 + $0x18] sm:$0xff] (!%p207_p3)  ;;  %vm304_vm1 = vcmask (!%p207_p3), 1041408   ;;  %v746_v11 = vmov (!%p207_p3), 0.0   ;;  %vm747_vm2 = vmmov (!%p207_p3), 0  }
   0xb   : > { %686 = vset.pattern.permute.xlu1 (!%p207_p3), %v745_v2  ;;  %269 = vperm.xlu0 (!%p207_p3), %685, %v263_v1   ;;  %v468_v8 = vld [vmem:[%s901_s4] sm:$0xf] (!%p207_p3)  ;;  %v688_v10 = vld [vmem:[%s898_s1 + $0x8] sm:$0xff] (!%p207_p3)   ;;  %vm474_vm7 = vcmask (!%p207_p3), 261120  }
   0xc   : > { %279 = vperm.xlu1 (!%p207_p3), %686, %v265_v3   ;;  %633 = vmatprep.subr.bf16.mxu1 (!%p207_p3), %v746_v11 }
   0xd   : > { %637 = vmatprep.mubr.msk.bf16.mxu1 (!%p207_p3), %vm747_vm2, %v746_v11 }
   0xf   : > { %274 = vperm.xlu0 (!%p207_p3), %685, %v264_v4  }
  0x10   : > { %s914_s19 = smov (!%p240_p5, %s731_s19), 1  ;;  %s916_s18 = smov (!%p242_p6, %s727_s18), 1  ;;  %284 = vperm.xlu1 %686, %v266_v5  }
  0x11   : > { %s610_s6 = sshll.u32 %s914_s19, 1 }
  0x12   : > { %s818_s7 = sadd.s32 %s610_s6, %s916_s18 }
  0x13   : > { %s611_s12 = sshll.u32 %s818_s7, 2  ;;  %471 = vperm.xlu0 %685, %v468_v8  }
  0x14   : > { %s247_s15 = scalar_lea.vmem %s897_s0, %s611_s12  ;;  %s255_s29 = scalar_lea.vmem %s902_s5, %s611_s12 }
  0x15   : > { %v257_v6 = vld [vmem:[%s247_s15] sm:$0xf] }
  0x16   : > { %v258_v7 = vpack.c.bf16 %v257_v6, %v257_v6 }
  0x18   : > { %641 = vmatprep.subr.msk.bf16.mxu0 %vm304_vm1, %v258_v7  ;;  %v306_v9 = vsel %vm304_vm1, %v258_v7, 0 }
  0x19   : > { %628 = vmatpush3.bf16.msra.mxu0 %v306_v9 }
  0x1c   : > { %630 = vmatmul.mubr.msk.bf16.vlgmr.msra.gmra.mrb[0].mxu0 %vm297_vm0, %v688_v10 }
  0x8a   : > { %v270_v13 = vpop.permute.xlu0 %269 }
  0x8b   : > { %v280_v12 = vpop.permute.xlu1 %279 }
  0x8e   : > { %v275_v20 = vpop.permute.xlu0 %274 }
  0x8f   : > { %v285_v15 = vpop.permute.xlu1 %284 }
  0xef   : > { %v631_v14 = vpop.f32.mrb[0].mxu0 }
  0xf0   : > { %v841_v16 = vadd.f32 %v631_v14, %v280_v12  ;;  %v342_v17 = vpop.f32.mrb[1].mxu0 }
  0xf1   : > { %v843_v18 = vadd.f32 %v342_v17, %v270_v13  ;;  %v632_v19 = vpop.f32.mrb[2].mxu0 }
  0xf2   : > { %v846_v21 = vmul.f32 0.70710677, %v841_v16  ;;  %v848_v22 = vadd.f32 %v632_v19, %v285_v15  ;;  %v345_v23 = vpop.f32.mrb[3].mxu0 }
  0xf3   : > { %v851_v24 = vmul.f32 0.70710677, %v843_v18  ;;  %v853_v25 = vadd.f32 %v345_v23, %v275_v20 }
  0xf4   : > { %v367_v26 = vand.u32 2147483647, %v846_v21  ;;  %v857_v27 = vmul.f32 0.70710677, %v848_v22  ;;  %vm447_vm3 = vcmp.ge.f32.partialorder %v846_v21, 0.0 }
  0xf5   : > { %v365_v28 = vand.u32 2147483647, %v851_v24  ;;  %v861_v29 = vmul.f32 0.70710677, %v853_v25  ;;  %vm445_vm4 = vcmp.ge.f32.partialorder %v851_v24, 0.0 }
  0xf6   : > { %v371_v30 = vmul.f32 0.3275911, %v367_v26  ;;  %v368_v31 = vand.u32 2147483647, %v857_v27  ;;  %v423_v40 = vsub.f32 0.0, %v367_v26  ;;  %vm448_vm5 = vcmp.ge.f32.partialorder %v857_v27, 0.0 }
  0xf7   : > { %v369_v32 = vmul.f32 0.3275911, %v365_v28  ;;  %v366_v33 = vand.u32 2147483647, %v861_v29  ;;  %v421_v41 = vsub.f32 0.0, %v365_v28  ;;  %vm446_vm6 = vcmp.ge.f32.partialorder %v861_v29, 0.0 }
  0xf8   : > { %v375_v34 = vadd.f32 1.0, %v371_v30  ;;  %v372_v35 = vmul.f32 0.3275911, %v368_v31  ;;  %v427_v43 = vmul.f32 %v423_v40, %v367_v26  ;;  %v424_v44 = vsub.f32 0.0, %v368_v31 }
  0xf9   : > { %v373_v36 = vadd.f32 1.0, %v369_v32  ;;  %v370_v37 = vmul.f32 0.3275911, %v366_v33  ;;  %v425_v47 = vmul.f32 %v421_v41, %v365_v28  ;;  %v422_v48 = vsub.f32 0.0, %v366_v33 }
  0xfa   : > { %689 = vrcp.f32 %v375_v34  ;;  %v376_v38 = vadd.f32 1.0, %v372_v35  ;;  %v433_v52 = vmul.f32 1.442695, %v427_v43  ;;  %v428_v53 = vmul.f32 %v424_v44, %v368_v31 }
  0xfb   : > { %691 = vrcp.f32 %v373_v36  ;;  %v374_v39 = vadd.f32 1.0, %v370_v37  ;;  %v429_v56 = vmul.f32 1.442695, %v425_v47  ;;  %v426_v59 = vmul.f32 %v422_v48, %v366_v33 }
  0xfc   : > { %693 = vrcp.f32 %v376_v38  ;;  %v435_v0 = vmul.f32 1.442695, %v428_v53 }
  0xfd   : > { %695 = vrcp.f32 %v374_v39  ;;  %v431_v5 = vmul.f32 1.442695, %v426_v59 }
  0xfe   : > { %697 = vpow2.f32 %v433_v52 }
  0xff   : > { %699 = vpow2.f32 %v429_v56 }
 0x100   : > { %701 = vpow2.f32 %v435_v0 }
 0x101   : > { %703 = vpow2.f32 %v431_v5 }
 0x104   : > { %v690_v42 = vpop.eup %689 }
 0x105   : > { %v692_v45 = vpop.eup %691  ;;  %v387_v46 = vmul.f32 1.0614054, %v690_v42 }
 0x106   : > { %v385_v49 = vmul.f32 1.0614054, %v692_v45  ;;  %v694_v51 = vpop.eup %693 }
 0x107   : > { %v391_v50 = vadd.f32 -1.4531521, %v387_v46  ;;  %v388_v57 = vmul.f32 1.0614054, %v694_v51  ;;  %v696_v58 = vpop.eup %695 }
 0x108   : > { %v389_v54 = vadd.f32 -1.4531521, %v385_v49  ;;  %v386_v63 = vmul.f32 1.0614054, %v696_v58  ;;  %v698_v31 = vpop.eup %697 }
 0x109   : > { %v395_v55 = vmul.f32 %v690_v42, %v391_v50  ;;  %v392_v62 = vadd.f32 -1.4531521, %v388_v57  ;;  %v700_v33 = vpop.eup %699 }
 0x10a   : > { %v393_v60 = vmul.f32 %v692_v45, %v389_v54  ;;  %v390_v4 = vadd.f32 -1.4531521, %v386_v63  ;;  %v702_v41 = vpop.eup %701  ;;  %v358_v63 = vmul.f32 0.5, %v853_v25 }
 0x10b   : > { %v399_v61 = vadd.f32 1.4214138, %v395_v55  ;;  %v396_v3 = vmul.f32 %v694_v51, %v392_v62  ;;  %v704_v48 = vpop.eup %703 }
 0x10c   : > { %v397_v1 = vadd.f32 1.4214138, %v393_v60  ;;  %v394_v9 = vmul.f32 %v696_v58, %v390_v4  ;;  %v357_v60 = vmul.f32 0.5, %v843_v18  ;;  %v472_v18 = vpop.permute.xlu0 %471 }
 0x10d   : > { %v403_v2 = vmul.f32 %v690_v42, %v399_v61  ;;  %v400_v8 = vadd.f32 1.4214138, %v396_v3 }
 0x10e   : > { %v401_v6 = vmul.f32 %v692_v45, %v397_v1  ;;  %v398_v14 = vadd.f32 1.4214138, %v394_v9 }
 0x10f   : > { %v407_v7 = vadd.f32 -0.28449672, %v403_v2  ;;  %v404_v13 = vmul.f32 %v694_v51, %v400_v8 }
 0x110   : > { %v405_v10 = vadd.f32 -0.28449672, %v401_v6  ;;  %v402_v20 = vmul.f32 %v696_v58, %v398_v14 }
 0x111   : > { %v411_v12 = vmul.f32 %v690_v42, %v407_v7  ;;  %v408_v19 = vadd.f32 -0.28449672, %v404_v13 }
 0x112   : > { %v409_v15 = vmul.f32 %v692_v45, %v405_v10  ;;  %v406_v30 = vadd.f32 -0.28449672, %v402_v20 }
 0x113   : > { %v415_v17 = vadd.f32 0.2548296, %v411_v12  ;;  %v412_v28 = vmul.f32 %v694_v51, %v408_v19 }
 0x114   : > { %v413_v23 = vadd.f32 0.2548296, %v409_v15  ;;  %v410_v36 = vmul.f32 %v696_v58, %v406_v30 }
 0x115   : > { %v419_v26 = vmul.f32 %v690_v42, %v415_v17  ;;  %v416_v35 = vadd.f32 0.2548296, %v412_v28 }
 0x116   : > { %v417_v32 = vmul.f32 %v692_v45, %v413_v23  ;;  %v414_v40 = vadd.f32 0.2548296, %v410_v36 }
 0x117   : > { %v439_v34 = vmul.f32 %v698_v31, %v419_v26  ;;  %v420_v39 = vmul.f32 %v694_v51, %v416_v35  ;;  %v359_v51 = vmul.f32 0.5, %v841_v16 }
 0x118   : > { %v437_v37 = vmul.f32 %v700_v33, %v417_v32  ;;  %v418_v47 = vmul.f32 %v696_v58, %v414_v40  ;;  %v360_v58 = vmul.f32 0.5, %v848_v22  ;;  %v465_v22 = vld [vmem:[%s900_s3] sm:$0x3] }
 0x119   : > { %v443_v38 = vsub.f32 1.0, %v439_v34  ;;  %v440_v46 = vmul.f32 %v702_v41, %v420_v39 }
 0x11a   : > { %v441_v43 = vsub.f32 1.0, %v437_v37  ;;  %v438_v45 = vmul.f32 %v704_v48, %v418_v47 }
 0x11b   : > { %v451_v44 = vsub.f32 0.0, %v443_v38  ;;  %v444_v50 = vsub.f32 1.0, %v440_v46 }
 0x11c   : > { %v449_v42 = vsub.f32 0.0, %v441_v43  ;;  %v442_v53 = vsub.f32 1.0, %v438_v45 }
 0x11d   : > { %v455_v49 = vsel %vm447_vm3, %v443_v38, %v451_v44  ;;  %v452_v52 = vsub.f32 0.0, %v444_v50 }
 0x11e   : > { %v453_v54 = vsel %vm445_vm4, %v441_v43, %v449_v42  ;;  %v459_v55 = vadd.f32 1.0, %v455_v49  ;;  %v450_v57 = vsub.f32 0.0, %v442_v53 }
 0x11f   : > { %v456_v56 = vsel %vm448_vm5, %v444_v50, %v452_v52  ;;  %v457_v21 = vadd.f32 1.0, %v453_v54 }
 0x120   : > { %v460_v59 = vadd.f32 1.0, %v456_v56  ;;  %v454_v61 = vsel %vm446_vm6, %v442_v53, %v450_v57  ;;  %v463_v24 = vmul.f32 %v459_v55, %v359_v51 }
 0x121   : > { %v458_v0 = vadd.f32 1.0, %v454_v61  ;;  %v461_v27 = vmul.f32 %v457_v21, %v357_v60 }
 0x122   : > { %v464_v62 = vmul.f32 %v460_v59, %v360_v58 }
 0x123   : > { %v462_v1 = vmul.f32 %v458_v0, %v358_v63 }
 0x124   : > { %v467_v16 = vpack.c.bf16 %v464_v62, %v463_v24 }
 0x125   : > { %v466_v2 = vpack.c.bf16 %v462_v1, %v461_v27 }
 0x127   : > { %634 = vmatpush3.bf16.msra.mxu1 %v466_v2 }
 0x128   : > { %635 = vmatprep.subr.bf16.mxu1 %v746_v11 }
 0x12b   : > { %636 = vmatpush3.bf16.msra.mxu1 %v467_v16 }
 0x12e   : > { %638 = vmatmul.mubr.msk.bf16.vlgmr.msra.gmra.mrb[0].mxu1 %vm474_vm7, %v465_v22 }
 0x201   : > { %v512_v25 = vpop.f32.mrb[0].mxu1 }
 0x202   : > { %v513_v29 = vadd.f32 %v512_v25, %v472_v18  ;;  %v639_v3 = vpop.f32.mrb[1].mxu1 }
 0x203   : > { %v515_v4 = vpop.f32.mrb[2].mxu1 }
 0x204   : > { %518 = vst [vmem:[%s255_s29] sm:$0xf] %v513_v29  ;;  %v640_v5 = vpop.f32.mrb[3].mxu1 }
 0x205 PF: > { %s15_s22 = sadd.s32 1, %s743_s22   ;;  %s903_s18 = smov %s735_s20 }
 0x206   : > { %p12_p7 = scmp.ge.s32.totalorder %s15_s22, 6   ;;  %s904_s19 = smov %s739_s21 }
 0x207   : > { %s905_s20 = smov %s908_s23  ;;  %s906_s21 = smov %s912_s24 }
 0x208   :  { %14 = sbr.rel (!%p12_p7) target bundleno = 3 (0x3), region = 70 }

</bundles_post_ra>
